<compile_context>
chip_gen: v6e
topology: v6e:2x2x1
jax: 0.10.0
libtpu: 0.0.40
codegen_flags: <defaults>
</compile_context>

<pallas_src>
import functools

import jax
import jax.numpy as jnp
from jax.experimental import pallas as pl
from jax.experimental.pallas import tpu as pltpu


def _cdiv(a, b):
    return (a + b - 1) // b


def _round_up(a, m):
    return _cdiv(a, m) * m


def _choose_tile(n, tile_m):
    """Batch tile: multiple of 8, <= tile_m, >=2 grid steps for medium/large
    batches (v7x dual TC), padded-tail waste bounded to ~<10% of the batch."""
    n8 = _round_up(max(n, 1), 8)
    if n8 <= 512:
        return n8                                   # single block, grid=(1,)
    tile = min(tile_m, _round_up(_cdiv(n8, 2), 8))  # at least 2 grid steps
    while tile > 256 and (_cdiv(n8, tile) * tile - n8) * 10 > n8:
        tile = max(256, _round_up(_cdiv(tile, 2), 8))
    return tile


def _mlp_kernel(x_ref, w1_ref, b1_ref, w2_ref, b2_ref, o_ref):
    # Cast activations to bf16 in-kernel for the MXU; accumulate in f32.
    x = x_ref[...].astype(jnp.bfloat16)
    h = jnp.dot(x, w1_ref[...], preferred_element_type=jnp.float32)
    h = jnp.maximum(h + b1_ref[...], 0.0)
    y = jnp.dot(h.astype(jnp.bfloat16), w2_ref[...],
                preferred_element_type=jnp.float32)
    # Narrow (3-lane) store: masked vst, but 42x less HBM writeback than the
    # previous 128-lane f32 padded output.
    o_ref[...] = (y + b2_ref[...]).astype(o_ref.dtype)


def warp_field_net_forward(x, w1_t, b1, w2_t, b2, *, tile_m=1024):
    """x: [N, in_dim] f32; w1_t: [in_dim, width]; b1: [1, width] (or [width]);
    w2_t: [width, out_dim]; b2: [1, out_dim] (or [out_dim]).
    Returns [N, out_dim] f32."""
    n, in_dim = x.shape
    width = w1_t.shape[1]
    out_dim = w2_t.shape[1]

    tile = _choose_tile(n, tile_m)
    grid = (_cdiv(n, tile),)

    # Tiny, grid-resident operands: cast weights to bf16, biases stay f32.
    w1_b = w1_t.astype(jnp.bfloat16)
    w2_b = w2_t.astype(jnp.bfloat16)
    b1_f = b1.astype(jnp.float32).reshape(1, width)
    b2_f = b2.astype(jnp.float32).reshape(1, out_dim)

    flops = 2 * n * (in_dim * width + width * out_dim)
    bytes_accessed = (x.size * x.dtype.itemsize
                      + w1_b.size * 2 + w2_b.size * 2
                      + b1_f.size * 4 + b2_f.size * 4
                      + n * out_dim * 4)

    return pl.pallas_call(
        _mlp_kernel,
        out_shape=jax.ShapeDtypeStruct((n, out_dim), jnp.float32),
        grid_spec=pltpu.PrefetchScalarGridSpec(
            num_scalar_prefetch=0,
            grid=grid,
            in_specs=[
                # x: tiled over batch, full (unpadded) feature dim.
                pl.BlockSpec((tile, in_dim), lambda i: (i, 0)),
                # weights / biases: whole array, resident across every step.
                pl.BlockSpec((in_dim, width), lambda i: (0, 0)),
                pl.BlockSpec((1, width), lambda i: (0, 0)),
                pl.BlockSpec((width, out_dim), lambda i: (0, 0)),
                pl.BlockSpec((1, out_dim), lambda i: (0, 0)),
            ],
            out_specs=pl.BlockSpec((tile, out_dim), lambda i: (i, 0)),
        ),
        compiler_params=pltpu.CompilerParams(
            dimension_semantics=("parallel",),
        ),
        cost_estimate=pl.CostEstimate(
            flops=flops, transcendentals=0, bytes_accessed=bytes_accessed),
    )(x, w1_b, b1_f, w2_b, b2_f)


def init_params(key, positions_dim=60, pose_dim=24, width=256, out_dim=3):
    """Deterministic init mimicking torch.nn.Linear default (uniform +-1/sqrt(fan_in))."""
    in_dim = positions_dim + pose_dim
    k1, k2, k3, k4 = jax.random.split(key, 4)
    bound1 = 1.0 / jnp.sqrt(in_dim)
    bound2 = 1.0 / jnp.sqrt(width)
    # Stored already transposed: [in_dim, width] and [width, out_dim].
    w1_t = jax.random.uniform(k1, (in_dim, width), jnp.float32, -bound1, bound1)
    b1 = jax.random.uniform(k2, (1, width), jnp.float32, -bound1, bound1)
    w2_t = jax.random.uniform(k3, (width, out_dim), jnp.float32, -bound2, bound2)
    b2 = jax.random.uniform(k4, (1, out_dim), jnp.float32, -bound2, bound2)
    return w1_t, b1, w2_t, b2


def reference_forward(x, w1_t, b1, w2_t, b2):
    h = jnp.maximum(x @ w1_t + b1, 0.0)
    return h @ w2_t + b2


if __name__ == "__main__":
    positions_dim, pose_dim, width = 60, 24, 256
    in_dim = positions_dim + pose_dim

    key = jax.random.PRNGKey(0)
    kx, kp = jax.random.split(key)
    w1_t, b1, w2_t, b2 = init_params(kp, positions_dim, pose_dim, width)

    fwd = jax.jit(functools.partial(warp_field_net_forward, tile_m=1024))

    # Primary small-shape check (batch exactly divisible by the tile).
    batch = 16
    x = jax.random.normal(kx, (batch, in_dim), jnp.float32)
    y = fwd(x, w1_t, b1, w2_t, b2)
    jax.block_until_ready(y)
    y_ref = reference_forward(x, w1_t, b1, w2_t, b2)
    assert y.shape == (batch, 3)
    # bf16 MXU operands (f32 accumulation) -> loosen tolerance vs f32 reference.
    assert jnp.allclose(y, y_ref, atol=5e-2, rtol=5e-2), "mismatch vs reference"

    # Ragged-batch check: block does not divide N, tail rows are masked stores.
    batch2 = 301
    x2 = jax.random.normal(jax.random.PRNGKey(1), (batch2, in_dim), jnp.float32)
    y2 = fwd(x2, w1_t, b1, w2_t, b2)
    jax.block_until_ready(y2)
    y2_ref = reference_forward(x2, w1_t, b1, w2_t, b2)
    assert y2.shape == (batch2, 3)
    assert jnp.allclose(y2, y2_ref, atol=5e-2, rtol=5e-2), "ragged mismatch"

    print("KERNEL_OK")
</pallas_src>

<mosaic_0001>
module attributes {stable_mosaic.version = 11 : i64} {
  func.func @_mlp_kernel(%arg0: i32, %arg1: memref<16x84xf32, #tpu.memory_space<vmem>>, %arg2: memref<84x256xbf16, #tpu.memory_space<vmem>>, %arg3: memref<1x256xf32, #tpu.memory_space<vmem>>, %arg4: memref<256x3xbf16, #tpu.memory_space<vmem>>, %arg5: memref<1x3xf32, #tpu.memory_space<vmem>>, %arg6: memref<16x3xf32, #tpu.memory_space<vmem>>) attributes {dimension_semantics = [#tpu.dimension_semantics<parallel>], iteration_bounds = array<i64: 1>, scalar_prefetch = 0 : i64, scratch_operands = 0 : i64, tpu.core_type = #tpu.core_type<tc>, window_params = [{transform_indices = @transform_0, window_bounds = array<i64: 16, 84>}, {pipeline_mode = #tpu.pipeline_mode<synchronous>, transform_indices = @transform_1, window_bounds = array<i64: 84, 256>}, {pipeline_mode = #tpu.pipeline_mode<synchronous>, transform_indices = @transform_2, window_bounds = array<i64: 1, 256>}, {pipeline_mode = #tpu.pipeline_mode<synchronous>, transform_indices = @transform_3, window_bounds = array<i64: 256, 3>}, {pipeline_mode = #tpu.pipeline_mode<synchronous>, transform_indices = @transform_4, window_bounds = array<i64: 1, 3>}, {transform_indices = @transform_5, window_bounds = array<i64: 16, 3>}]} {
    %c0 = arith.constant 0 : index
    %c0_0 = arith.constant 0 : index
    %0 = vector.load %arg1[%c0, %c0_0] : memref<16x84xf32, #tpu.memory_space<vmem>>, vector<16x84xf32>
    %1 = arith.truncf %0 : vector<16x84xf32> to vector<16x84xbf16>
    %c0_1 = arith.constant 0 : index
    %c0_2 = arith.constant 0 : index
    %2 = vector.load %arg2[%c0_1, %c0_2] : memref<84x256xbf16, #tpu.memory_space<vmem>>, vector<84x256xbf16>
    %cst = arith.constant dense<0.000000e+00> : vector<16x256xf32>
    %3 = tpu.matmul %1, %2, %cst {dimension_numbers = #tpu.dot_dimension_numbers<[1], [0], [0], [1], [0, 0, 1, 1], [], []>} : vector<16x84xbf16>, vector<84x256xbf16>, vector<16x256xf32> -> vector<16x256xf32>
    %c0_3 = arith.constant 0 : index
    %c0_4 = arith.constant 0 : index
    %4 = vector.load %arg3[%c0_3, %c0_4] : memref<1x256xf32, #tpu.memory_space<vmem>>, vector<1x256xf32>
    %5 = vector.broadcast %4 : vector<1x256xf32> to vector<16x256xf32>
    %6 = arith.addf %3, %5 : vector<16x256xf32>
    %cst_5 = arith.constant 0.000000e+00 : f32
    %7 = vector.broadcast %cst_5 : f32 to vector<16x256xf32>
    %8 = arith.maximumf %6, %7 : vector<16x256xf32>
    %9 = arith.truncf %8 : vector<16x256xf32> to vector<16x256xbf16>
    %c0_6 = arith.constant 0 : index
    %c0_7 = arith.constant 0 : index
    %10 = vector.load %arg4[%c0_6, %c0_7] : memref<256x3xbf16, #tpu.memory_space<vmem>>, vector<256x3xbf16>
    %cst_8 = arith.constant dense<0.000000e+00> : vector<16x3xf32>
    %11 = tpu.matmul %9, %10, %cst_8 {dimension_numbers = #tpu.dot_dimension_numbers<[1], [0], [0], [1], [0, 0, 1, 1], [], []>} : vector<16x256xbf16>, vector<256x3xbf16>, vector<16x3xf32> -> vector<16x3xf32>
    %c0_9 = arith.constant 0 : index
    %c0_10 = arith.constant 0 : index
    %12 = vector.load %arg5[%c0_9, %c0_10] : memref<1x3xf32, #tpu.memory_space<vmem>>, vector<1x3xf32>
    %13 = vector.broadcast %12 : vector<1x3xf32> to vector<16x3xf32>
    %14 = arith.addf %11, %13 : vector<16x3xf32>
    %c0_11 = arith.constant 0 : index
    %c0_12 = arith.constant 0 : index
    %15 = vector.load %arg6[%c0_11, %c0_12] : memref<16x3xf32, #tpu.memory_space<vmem>>, vector<16x3xf32>
    tpu.vector_store %arg6[%c0_11, %c0_12], %14 {strides = array<i32>} : memref<16x3xf32, #tpu.memory_space<vmem>>, vector<16x3xf32>,
    return
  }
  func.func @transform_0(%arg0: i32) -> (i32, i32) {
    %c0_i32 = arith.constant 0 : i32
    %c0_i32_0 = arith.constant 0 : i32
    return %arg0, %c0_i32 : i32, i32
  }
  func.func @transform_1(%arg0: i32) -> (i32, i32) {
    %c0_i32 = arith.constant 0 : i32
    %c0_i32_0 = arith.constant 0 : i32
    %c0_i32_1 = arith.constant 0 : i32
    return %c0_i32, %c0_i32_0 : i32, i32
  }
  func.func @transform_2(%arg0: i32) -> (i32, i32) {
    %c0_i32 = arith.constant 0 : i32
    %c0_i32_0 = arith.constant 0 : i32
    %c0_i32_1 = arith.constant 0 : i32
    return %c0_i32, %c0_i32_0 : i32, i32
  }
  func.func @transform_3(%arg0: i32) -> (i32, i32) {
    %c0_i32 = arith.constant 0 : i32
    %c0_i32_0 = arith.constant 0 : i32
    %c0_i32_1 = arith.constant 0 : i32
    return %c0_i32, %c0_i32_0 : i32, i32
  }
  func.func @transform_4(%arg0: i32) -> (i32, i32) {
    %c0_i32 = arith.constant 0 : i32
    %c0_i32_0 = arith.constant 0 : i32
    %c0_i32_1 = arith.constant 0 : i32
    return %c0_i32, %c0_i32_0 : i32, i32
  }
  func.func @transform_5(%arg0: i32) -> (i32, i32) {
    %c0_i32 = arith.constant 0 : i32
    %c0_i32_0 = arith.constant 0 : i32
    return %arg0, %c0_i32 : i32, i32
  }
}

</mosaic_0001>

<bundles_post_ra>
// kernel: warp_field_net_forward.1
= control target key start
LH: loop header
LB: loop body
LE: loop exit
PB: predicated region body
PF: predicated region fallthrough
CT: control target
= control target key end

     0   :  { %vm106_vm0 = vcmask 1041408   ;;  %v432_v1 = vmov 0   ;;  %vm102_vm1 = vcmask 687104   ;;  %v37_v34 = vlaneseq  ;;  %s562_s1 = inlined_call_operand.vmem [shape: bf16[84,256], index: 1, kind: input, shape index: {}]   ;;  %s563_s3 = inlined_call_operand.vmem [shape: bf16[256,3], index: 3, kind: input, shape index: {}]   ;;  %s564_s0 = inlined_call_operand.vmem [shape: f32[16,84], index: 0, kind: input, shape index: {}]   ;;  %s565_s2 = inlined_call_operand.vmem [shape: f32[1,256], index: 2, kind: input, shape index: {}]   ;;  %s566_s4 = inlined_call_operand.vmem [shape: f32[1,3], index: 4, kind: input, shape index: {}]   ;;  %s567_s5 = inlined_call_operand.vmem [shape: f32[16,3], index: 5, kind: output, shape index: {}]  }
   0x1   :  { %v34_v0 = vld [vmem:[%s562_s1 + $0x50] sm:$0x33]  ;;  %145 = vmatprep.mubr.bf16.mxu0 %v432_v1  ;;  %v401_v4 = vld [vmem:[%s562_s1 + $0x44] ss:$8 sps:$4 sm:$0xff]   ;;  %v403_v6 = vld [vmem:[%s562_s1 + $0x40] ss:$8 sps:$4 sm:$0xff]  }
   0x2   :  { %v356_v2 = vcombine.high %v34_v0, %v34_v0  ;;  %v355_v3 = vcombine.low %v34_v0, %v34_v0  ;;  %v404_v7 = vld [vmem:[%s562_s1 + $0x34] ss:$8 sps:$4 sm:$0xff]   ;;  %v406_v8 = vld [vmem:[%s562_s1 + $0x30] ss:$8 sps:$4 sm:$0xff]   ;;  %v407_v9 = vld [vmem:[%s562_s1 + $0x24] ss:$8 sps:$4 sm:$0xff]  }
   0x3   :  { %v416_v10 = vld [vmem:[%s563_s3 + $0x78] sm:$0xff]   ;;  %v409_v12 = vld [vmem:[%s562_s1 + $0x20] ss:$8 sps:$4 sm:$0xff]   ;;  %v418_v13 = vld [vmem:[%s563_s3 + $0x70] sm:$0xff]   ;;  %v38_v35 = vshrl.u32 %v37_v34, 7  ;;  %vm338_vm2 = vcmask 23552  }
   0x4   :  { %357 = vmatprep.subr.msk.bf16.mxu0 %vm106_vm0, %v356_v2  ;;  %v108_v5 = vsel %vm106_vm0, %v355_v3, 0  ;;  %v417_v11 = vld [vmem:[%s563_s3 + $0x38] sm:$0xff]   ;;  %376 = vmatprep.subr.bf16.mxu1 %v416_v10  ;;  %v419_v14 = vld [vmem:[%s563_s3 + $0x30] sm:$0xff]   ;;  %v420_v15 = vld [vmem:[%s563_s3 + $0x68] sm:$0xff]  }
   0x5   :  { %118 = vmatpush1.bf16.msra.mxu0 %v108_v5  ;;  %377 = vmatpush3.bf16.msra.mxu1 %v417_v11  ;;  %v410_v16 = vld [vmem:[%s562_s1 + $0x14] ss:$8 sps:$4 sm:$0xff]   ;;  %v412_v17 = vld [vmem:[%s562_s1 + $0x10] ss:$8 sps:$4 sm:$0xff]   ;;  %v421_v18 = vld [vmem:[%s563_s3 + $0x28] sm:$0xff]   ;;  %v43_v36 = vsub.s32 1, %v38_v35 }
   0x6   :  { %119 = vmatprep.subr.bf16.mxu0 %v401_v4  ;;  %378 = vmatprep.subr.bf16.mxu1 %v418_v13  ;;  %v422_v19 = vld [vmem:[%s563_s3 + $0x60] sm:$0xff]   ;;  %v22_v24 = vld [vmem:[%s564_s0 + $0x8] sm:$0xff]  ;;  %v424_v25 = vld [vmem:[%s563_s3 + $0x58] sm:$0xff]   ;;  %v39_v37 = vsub.s32 0, %v38_v35 }
   0x7   :  { %v413_v20 = vld [vmem:[%s562_s1 + $0x4] ss:$8 sps:$4 sm:$0xff]   ;;  %v415_v22 = vld [vmem:[%s562_s1] ss:$8 sps:$4 sm:$0xff]   ;;  %v425_v27 = vld [vmem:[%s563_s3 + $0x18] sm:$0xff]  }
   0x8   :  { %v423_v21 = vld [vmem:[%s563_s3 + $0x20] sm:$0xff]   ;;  %v426_v28 = vld [vmem:[%s563_s3 + $0x50] sm:$0xff]   ;;  %v428_v30 = vld [vmem:[%s563_s3 + $0x48] sm:$0xff]  }
   0x9   :  { %120 = vmatpush1.bf16.msra.mxu0 %v403_v6  ;;  %379 = vmatpush3.bf16.msra.mxu1 %v419_v14  ;;  %v21_v23 = vld [vmem:[%s564_s0] sm:$0xff]  ;;  %v427_v29 = vld [vmem:[%s563_s3 + $0x10] sm:$0xff]   ;;  %v429_v31 = vld [vmem:[%s563_s3 + $0x8] sm:$0xff]  }
   0xa   :  { %121 = vmatprep.subr.bf16.mxu0 %v404_v7  ;;  %380 = vmatprep.subr.bf16.mxu1 %v420_v15  ;;  %v23_v26 = vpack.c.bf16 %v22_v24, %v21_v23  ;;  %v430_v32 = vld [vmem:[%s563_s3 + $0x40] sm:$0xff]  }
   0xb   :  { %v431_v33 = vld [vmem:[%s563_s3] sm:$0xff]  }
   0xc   :  { %v35_v38 = vld [vmem:[%s565_s2] sm:$0x3] }
   0xd   :  { %122 = vmatpush1.bf16.msra.mxu0 %v406_v8  ;;  %381 = vmatpush3.bf16.msra.mxu1 %v421_v18  ;;  %v44_v40 = vrot.slane %v35_v38, %v43_v36  ;;  %v40_v41 = vrot.slane %v35_v38, %v39_v37  ;;  %v359_v56 = vld [vmem:[%s566_s4] ss:$0 sm:$0xff] }
   0xe   :  { %123 = vmatprep.subr.bf16.mxu0 %v407_v9  ;;  %382 = vmatprep.subr.bf16.mxu1 %v422_v19 }
  0x11   :  { %124 = vmatpush1.bf16.msra.mxu0 %v409_v12  ;;  %383 = vmatpush3.bf16.msra.mxu1 %v423_v21 }
  0x12   :  { %125 = vmatprep.subr.bf16.mxu0 %v410_v16  ;;  %384 = vmatprep.subr.bf16.mxu1 %v424_v25 }
  0x15   :  { %126 = vmatpush1.bf16.msra.mxu0 %v412_v17  ;;  %385 = vmatpush3.bf16.msra.mxu1 %v425_v27 }
  0x16   :  { %127 = vmatprep.subr.bf16.mxu0 %v413_v20  ;;  %386 = vmatprep.subr.bf16.mxu1 %v426_v28 }
  0x19   :  { %128 = vmatpush1.bf16.msra.mxu0 %v415_v22  ;;  %387 = vmatpush3.bf16.msra.mxu1 %v427_v29 }
  0x1a   :  { %388 = vmatprep.subr.bf16.mxu1 %v428_v30 }
  0x1c   :  { %358 = vmatmul.mubr.msk.bf16.vlgmr.msra.gmra.mxu0 %vm102_vm1, %v23_v26 }
  0x1d   :  { %389 = vmatpush3.bf16.msra.mxu1 %v429_v31 }
  0x1e   :  { %390 = vmatprep.subr.bf16.mxu1 %v430_v32 }
  0x21   :  { %391 = vmatpush3.bf16.msra.mxu1 %v431_v33 }
  0xdc   :  { %v147_v39 = vpop.f32.mrf.mxu0 }
  0xdd   :  { %v148_v46 = vadd.f32 %v147_v39, %v40_v41 }
  0xde   :  { %v149_v42 = vpop.f32.mrf.mxu0 }
  0xdf   :  { %v150_v44 = vadd.f32 %v149_v42, %v44_v40  ;;  %v156_v52 = vmax.f32 %v148_v46, 0.0 }
  0xe0   :  { %v151_v43 = vpop.f32.mrf.mxu0 }
  0xe1   :  { %v152_v45 = vadd.f32 %v151_v43, %v40_v41  ;;  %v157_v50 = vmax.f32 %v150_v44, 0.0 }
  0xe2   :  { %v153_v47 = vpop.f32.mrf.mxu0 }
  0xe3   :  { %v154_v48 = vadd.f32 %v153_v47, %v44_v40  ;;  %v158_v49 = vmax.f32 %v152_v45, 0.0 }
  0xe5   :  { %v159_v51 = vmax.f32 %v154_v48, 0.0  ;;  %v160_v54 = vpack.c.bf16 %v158_v49, %v156_v52 }
  0xe7   :  { %v161_v53 = vpack.c.bf16 %v159_v51, %v157_v50 }
  0xe9   :  { %329 = vmatprep.mubr.bf16.mxu1 %v161_v53 }
  0xea   :  { %330 = vmatmul.mubr.bf16.vlgmr.msra.gmra.mxu1 %v160_v54 }
 0x1aa   :  { %v392_v55 = vpop.f32.mrf.mxu1 }
 0x1ac   :  { %v393_v57 = vpop.f32.mrf.mxu1 }
 0x1ad   :  { %v394_v58 = vadd.f32 %v393_v57, %v392_v55 }
 0x1ae   :  { %v395_v59 = vpop.f32.mrf.mxu1 }
 0x1af   :  { %v332_v60 = vadd.f32 %v394_v58, %v359_v56 }
 0x1b0   :  { %v396_v61 = vpop.f32.mrf.mxu1 }
 0x1b1   :  { %339 = vst.msk [vmem:[%s567_s5] sm:$0xff] %vm338_vm2, %v332_v60  ;;  %v397_v62 = vadd.f32 %v396_v61, %v395_v59 }
 0x1b3   :  { %v335_v63 = vadd.f32 %v397_v62, %v359_v56 }
 0x1b5   :  { %340 = vst.msk [vmem:[%s567_s5 + $0x8] sm:$0xff] %vm338_vm2, %v335_v63 }

</bundles_post_ra>
